<compile_context>
chip_gen: v7x
topology: tpu7x:2x2x1
jax: 0.10.0
libtpu: 0.0.40
codegen_flags: <defaults>
</compile_context>

<pallas_src>
import functools

import jax
import jax.numpy as jnp
from jax.experimental import pallas as pl
from jax.experimental.pallas import tpu as pltpu


def _custom_loss_kernel(x_ref, t_ref, out_ref, inter_acc, card_acc, ce_acc,
                        *, smooth, inv_npix, inv_ncw):
    """Processes one (C, TH, W) logits tile and one (TH, W) targets tile."""
    C = x_ref.shape[0]

    step = pl.program_id(0) * pl.num_programs(1) + pl.program_id(1)
    num_steps = pl.num_programs(0) * pl.num_programs(1)

    @pl.when(step == 0)
    def _init():
        inter_acc[...] = jnp.zeros_like(inter_acc)
        card_acc[...] = jnp.zeros_like(card_acc)
        ce_acc[...] = jnp.zeros_like(ce_acc)

    t = t_ref[...]                                      # (TH, W) int32

    # ---- running max over the class axis (numerically stable softmax) ----------
    m = x_ref[0].astype(jnp.float32)
    for c in range(1, C):
        m = jnp.maximum(m, x_ref[c].astype(jnp.float32))

    # ---- exp / sum-exp over classes; gather logit at target class on the fly ----
    exps = []
    se = None
    x_at_t = jnp.zeros_like(m)
    for c in range(C):
        xc = x_ref[c].astype(jnp.float32)
        e = jnp.exp(xc - m)
        exps.append(e)
        se = e if se is None else se + e
        x_at_t = x_at_t + jnp.where(t == c, xc, 0.0)

    # cross entropy without materializing log-softmax:
    #   ce = logsumexp(x) - x[target] = m + log(se) - x_at_t
    ce_acc[...] += (m + jnp.log(se)) - x_at_t

    # softmax normalization via the (otherwise idle) EUP reciprocal
    inv_se = pl.reciprocal(se, approx=True)

    # ---- dice statistics: reference dims=(0, 2) == sum over batch and H ---------
    for c in range(C):
        mask = (t == c).astype(jnp.float32)             # one-hot slab for class c
        p = exps[c] * inv_se                            # softmax probabilities
        inter_acc[c] = inter_acc[c] + jnp.sum(p * mask, axis=0, keepdims=True)
        card_acc[c] = card_acc[c] + jnp.sum(p + mask, axis=0, keepdims=True)

    # ---- finalize on the last grid step ------------------------------------------
    @pl.when(step == num_steps - 1)
    def _finalize():
        dice = (2.0 * inter_acc[...] + smooth) / (card_acc[...] + smooth)   # (C,1,W)
        dice_sum = jnp.sum(jnp.sum(dice, axis=0), axis=1, keepdims=True)    # (1,1)
        ce_sum = jnp.sum(jnp.sum(ce_acc[...], axis=1, keepdims=True),
                         axis=0, keepdims=True)                             # (1,1)
        ce_mean = ce_sum * inv_npix
        dice_loss = 1.0 - dice_sum * inv_ncw
        out_ref[...] = 0.3 * ce_mean + 0.7 * dice_loss


def _choose_tile_h(H, C, W, itemsize, target_bytes=4 << 20):
    """Largest TH that divides H, is 8-aligned (or == H), and keeps the logits tile
    around `target_bytes` so the double-buffered pipeline fits every TPU generation."""
    cap = max(8, target_bytes // max(1, C * W * itemsize))
    for th in range(min(H, cap), 0, -1):
        if H % th == 0 and (th % 8 == 0 or th == H):
            return th
    return H


def custom_loss(inputs_nchw, targets_nhw, smooth=1.0):
    """CustomLoss.forward: inputs (N, C, H, W) float logits, targets (N, H, W) class ids."""
    N, C, H, W = inputs_nchw.shape

    # No NCHW -> NHWC transpose: the kernel grids directly over the NCHW layout.
    x = inputs_nchw
    if x.dtype not in (jnp.float32, jnp.bfloat16):
        x = x.astype(jnp.float32)      # bf16 stays bf16 in HBM; upcast happens in-kernel
    t = targets_nhw.astype(jnp.int32)

    itemsize = jnp.dtype(x.dtype).itemsize
    TH = _choose_tile_h(H, C, W, itemsize)
    grid = (N, H // TH)

    # VMEM budget: double-buffered input tiles + f32 working set + accumulators.
    x_tile = C * TH * W * itemsize
    t_tile = TH * W * 4
    est = 2 * (x_tile + t_tile) + 3 * C * TH * W * 4 + (8 << 20)
    vmem_limit = int(min(max(est, 32 << 20), 64 << 20))

    kernel = functools.partial(
        _custom_loss_kernel,
        smooth=float(smooth),
        inv_npix=1.0 / float(N * H * W),
        inv_ncw=1.0 / float(C * W),
    )

    out = pl.pallas_call(
        kernel,
        out_shape=jax.ShapeDtypeStruct((1, 1), jnp.float32),
        grid_spec=pltpu.PrefetchScalarGridSpec(
            num_scalar_prefetch=0,
            grid=grid,
            in_specs=[
                # (1, C, TH, W) logits tile; batch dim squeezed away in the kernel.
                pl.BlockSpec((None, C, TH, W), lambda n, h: (n, 0, h, 0)),
                # (1, TH, W) targets tile.
                pl.BlockSpec((None, TH, W), lambda n, h: (n, h, 0)),
            ],
            out_specs=pl.BlockSpec((1, 1), lambda n, h: (0, 0)),
            scratch_shapes=[
                pltpu.VMEM((C, 1, W), jnp.float32),   # intersection accumulator
                pltpu.VMEM((C, 1, W), jnp.float32),   # cardinality accumulator
                pltpu.VMEM((TH, W), jnp.float32),     # per-pixel CE accumulator
            ],
        ),
        compiler_params=pltpu.CompilerParams(
            dimension_semantics=("arbitrary", "arbitrary"),
            vmem_limit_bytes=vmem_limit,
        ),
    )(x, t)
    # TODO(synk): on v7x, a leading 2-way "parallel" grid axis with per-core partial
    # (ce, inter, card) outputs + a wrapper combine would use both TensorCores.
    return out[0, 0]


def custom_loss_ref(inputs, targets, smooth=1.0):
    """Pure-JAX reference matching the PyTorch forward, for correctness checking."""
    N, C, H, W = inputs.shape
    xf = inputs.astype(jnp.float32)
    onehot = jax.nn.one_hot(targets, C, axis=1, dtype=jnp.float32)   # (N, C, H, W)
    probas = jax.nn.softmax(xf, axis=1)
    inter = jnp.sum(probas * onehot, axis=(0, 2))                    # (C, W) -- dims=(0,2)
    card = jnp.sum(probas + onehot, axis=(0, 2))
    dice_loss = 1.0 - jnp.mean((2.0 * inter + smooth) / (card + smooth))
    logp = jax.nn.log_softmax(xf, axis=1)
    ce = -jnp.mean(jnp.sum(onehot * logp, axis=1))
    return ce * 0.3 + dice_loss * 0.7


if __name__ == "__main__":
    key = jax.random.PRNGKey(0)
    k1, k2 = jax.random.split(key)

    N, C, H, W = 2, 4, 16, 16
    inputs = jax.random.normal(k1, (N, C, H, W), dtype=jnp.float32)
    targets = jax.random.randint(k2, (N, H, W), 0, C, dtype=jnp.int32)

    loss = jax.block_until_ready(custom_loss(inputs, targets))
    ref = jax.block_until_ready(custom_loss_ref(inputs, targets))

    # Tolerance accounts for the EUP approximate reciprocal used in the softmax
    # normalization (perturbs the dice term at the ~1e-4 level).
    assert jnp.allclose(loss, ref, atol=1e-3, rtol=1e-3), (float(loss), float(ref))

    print("KERNEL_OK")
</pallas_src>

<mosaic_0001>
module attributes {stable_mosaic.version = 11 : i64} {
  func.func @_custom_loss_kernel(%arg0: i32, %arg1: i32, %arg2: memref<1x4x16x16xf32, #tpu.memory_space<vmem>>, %arg3: memref<1x16x16xi32, #tpu.memory_space<vmem>>, %arg4: memref<1x1xf32, #tpu.memory_space<vmem>>, %arg5: memref<4x1x16xf32, #tpu.memory_space<vmem>>, %arg6: memref<4x1x16xf32, #tpu.memory_space<vmem>>, %arg7: memref<16x16xf32, #tpu.memory_space<vmem>>) attributes {dimension_semantics = [#tpu.dimension_semantics<arbitrary>, #tpu.dimension_semantics<arbitrary>], iteration_bounds = array<i64: 2, 1>, scalar_prefetch = 0 : i64, scratch_operands = 3 : i64, tpu.core_type = #tpu.core_type<tc>, window_params = [{transform_indices = @transform_0, window_bounds = array<i64: 1, 4, 16, 16>}, {transform_indices = @transform_1, window_bounds = array<i64: 1, 16, 16>}, {pipeline_mode = #tpu.pipeline_mode<synchronous>, transform_indices = @transform_2, window_bounds = array<i64: 1, 1>}]} {
    %c1_i32 = arith.constant 1 : i32
    %0 = arith.muli %arg0, %c1_i32 : i32
    %1 = arith.addi %0, %arg1 : i32
    %c0_i32 = arith.constant 0 : i32
    %2 = arith.cmpi eq, %1, %c0_i32 : i32
    %3 = arith.extui %2 : i1 to i32
    %c0_i32_0 = arith.constant 0 : i32
    %4 = arith.cmpi ne, %3, %c0_i32_0 : i32
    scf.if %4 {
      %cst_104 = arith.constant 0.000000e+00 : f32
      %160 = vector.broadcast %cst_104 : f32 to vector<4x1x16xf32>
      %c0_105 = arith.constant 0 : index
      %c0_106 = arith.constant 0 : index
      %c0_107 = arith.constant 0 : index
      %161 = vector.load %arg5[%c0_105, %c0_106, %c0_107] : memref<4x1x16xf32, #tpu.memory_space<vmem>>, vector<4x1x16xf32>
      tpu.vector_store %arg5[%c0_105, %c0_106, %c0_107], %160 {strides = array<i32>} : memref<4x1x16xf32, #tpu.memory_space<vmem>>, vector<4x1x16xf32>,
      %cst_108 = arith.constant 0.000000e+00 : f32
      %162 = vector.broadcast %cst_108 : f32 to vector<4x1x16xf32>
      %c0_109 = arith.constant 0 : index
      %c0_110 = arith.constant 0 : index
      %c0_111 = arith.constant 0 : index
      %163 = vector.load %arg6[%c0_109, %c0_110, %c0_111] : memref<4x1x16xf32, #tpu.memory_space<vmem>>, vector<4x1x16xf32>
      tpu.vector_store %arg6[%c0_109, %c0_110, %c0_111], %162 {strides = array<i32>} : memref<4x1x16xf32, #tpu.memory_space<vmem>>, vector<4x1x16xf32>,
      %cst_112 = arith.constant 0.000000e+00 : f32
      %164 = vector.broadcast %cst_112 : f32 to vector<16x16xf32>
      %c0_113 = arith.constant 0 : index
      %c0_114 = arith.constant 0 : index
      %165 = vector.load %arg7[%c0_113, %c0_114] : memref<16x16xf32, #tpu.memory_space<vmem>>, vector<16x16xf32>
      tpu.vector_store %arg7[%c0_113, %c0_114], %164 {strides = array<i32>} : memref<16x16xf32, #tpu.memory_space<vmem>>, vector<16x16xf32>,
    } else {
    }
    %c0 = arith.constant 0 : index
    %c0_1 = arith.constant 0 : index
    %c0_2 = arith.constant 0 : index
    %5 = vector.load %arg3[%c0, %c0_1, %c0_2] : memref<1x16x16xi32, #tpu.memory_space<vmem>>, vector<1x16x16xi32>
    %6 = vector.shape_cast %5 : vector<1x16x16xi32> to vector<16x16xi32>
    %c0_3 = arith.constant 0 : index
    %c0_4 = arith.constant 0 : index
    %c0_5 = arith.constant 0 : index
    %c0_6 = arith.constant 0 : index
    %7 = vector.load %arg2[%c0_3, %c0_4, %c0_5, %c0_6] : memref<1x4x16x16xf32, #tpu.memory_space<vmem>>, vector<1x1x16x16xf32>
    %8 = vector.shape_cast %7 : vector<1x1x16x16xf32> to vector<16x16xf32>
    %c0_7 = arith.constant 0 : index
    %c1 = arith.constant 1 : index
    %c0_8 = arith.constant 0 : index
    %c0_9 = arith.constant 0 : index
    %9 = vector.load %arg2[%c0_7, %c1, %c0_8, %c0_9] : memref<1x4x16x16xf32, #tpu.memory_space<vmem>>, vector<1x1x16x16xf32>
    %10 = vector.shape_cast %9 : vector<1x1x16x16xf32> to vector<16x16xf32>
    %11 = arith.maximumf %8, %10 : vector<16x16xf32>
    %c0_10 = arith.constant 0 : index
    %c2 = arith.constant 2 : index
    %c0_11 = arith.constant 0 : index
    %c0_12 = arith.constant 0 : index
    %12 = vector.load %arg2[%c0_10, %c2, %c0_11, %c0_12] : memref<1x4x16x16xf32, #tpu.memory_space<vmem>>, vector<1x1x16x16xf32>
    %13 = vector.shape_cast %12 : vector<1x1x16x16xf32> to vector<16x16xf32>
    %14 = arith.maximumf %11, %13 : vector<16x16xf32>
    %c0_13 = arith.constant 0 : index
    %c3 = arith.constant 3 : index
    %c0_14 = arith.constant 0 : index
    %c0_15 = arith.constant 0 : index
    %15 = vector.load %arg2[%c0_13, %c3, %c0_14, %c0_15] : memref<1x4x16x16xf32, #tpu.memory_space<vmem>>, vector<1x1x16x16xf32>
    %16 = vector.shape_cast %15 : vector<1x1x16x16xf32> to vector<16x16xf32>
    %17 = arith.maximumf %14, %16 : vector<16x16xf32>
    %cst = arith.constant 0.000000e+00 : f32
    %18 = vector.broadcast %cst : f32 to vector<16x16xf32>
    %c0_16 = arith.constant 0 : index
    %c0_17 = arith.constant 0 : index
    %c0_18 = arith.constant 0 : index
    %c0_19 = arith.constant 0 : index
    %19 = vector.load %arg2[%c0_16, %c0_17, %c0_18, %c0_19] : memref<1x4x16x16xf32, #tpu.memory_space<vmem>>, vector<1x1x16x16xf32>
    %20 = vector.shape_cast %19 : vector<1x1x16x16xf32> to vector<16x16xf32>
    %21 = arith.subf %20, %17 : vector<16x16xf32>
    %22 = math.exp %21 : vector<16x16xf32>
    %c0_i32_20 = arith.constant 0 : i32
    %23 = vector.broadcast %c0_i32_20 : i32 to vector<16x16xi32>
    %24 = arith.cmpi eq, %6, %23 : vector<16x16xi32>
    %cst_21 = arith.constant 0.000000e+00 : f32
    %25 = vector.broadcast %cst_21 : f32 to vector<16x16xf32>
    %26 = arith.select %24, %20, %25 : vector<16x16xi1>, vector<16x16xf32>
    %27 = arith.addf %18, %26 : vector<16x16xf32>
    %c0_22 = arith.constant 0 : index
    %c1_23 = arith.constant 1 : index
    %c0_24 = arith.constant 0 : index
    %c0_25 = arith.constant 0 : index
    %28 = vector.load %arg2[%c0_22, %c1_23, %c0_24, %c0_25] : memref<1x4x16x16xf32, #tpu.memory_space<vmem>>, vector<1x1x16x16xf32>
    %29 = vector.shape_cast %28 : vector<1x1x16x16xf32> to vector<16x16xf32>
    %30 = arith.subf %29, %17 : vector<16x16xf32>
    %31 = math.exp %30 : vector<16x16xf32>
    %32 = arith.addf %22, %31 : vector<16x16xf32>
    %c1_i32_26 = arith.constant 1 : i32
    %33 = vector.broadcast %c1_i32_26 : i32 to vector<16x16xi32>
    %34 = arith.cmpi eq, %6, %33 : vector<16x16xi32>
    %cst_27 = arith.constant 0.000000e+00 : f32
    %35 = vector.broadcast %cst_27 : f32 to vector<16x16xf32>
    %36 = arith.select %34, %29, %35 : vector<16x16xi1>, vector<16x16xf32>
    %37 = arith.addf %27, %36 : vector<16x16xf32>
    %c0_28 = arith.constant 0 : index
    %c2_29 = arith.constant 2 : index
    %c0_30 = arith.constant 0 : index
    %c0_31 = arith.constant 0 : index
    %38 = vector.load %arg2[%c0_28, %c2_29, %c0_30, %c0_31] : memref<1x4x16x16xf32, #tpu.memory_space<vmem>>, vector<1x1x16x16xf32>
    %39 = vector.shape_cast %38 : vector<1x1x16x16xf32> to vector<16x16xf32>
    %40 = arith.subf %39, %17 : vector<16x16xf32>
    %41 = math.exp %40 : vector<16x16xf32>
    %42 = arith.addf %32, %41 : vector<16x16xf32>
    %c2_i32 = arith.constant 2 : i32
    %43 = vector.broadcast %c2_i32 : i32 to vector<16x16xi32>
    %44 = arith.cmpi eq, %6, %43 : vector<16x16xi32>
    %cst_32 = arith.constant 0.000000e+00 : f32
    %45 = vector.broadcast %cst_32 : f32 to vector<16x16xf32>
    %46 = arith.select %44, %39, %45 : vector<16x16xi1>, vector<16x16xf32>
    %47 = arith.addf %37, %46 : vector<16x16xf32>
    %c0_33 = arith.constant 0 : index
    %c3_34 = arith.constant 3 : index
    %c0_35 = arith.constant 0 : index
    %c0_36 = arith.constant 0 : index
    %48 = vector.load %arg2[%c0_33, %c3_34, %c0_35, %c0_36] : memref<1x4x16x16xf32, #tpu.memory_space<vmem>>, vector<1x1x16x16xf32>
    %49 = vector.shape_cast %48 : vector<1x1x16x16xf32> to vector<16x16xf32>
    %50 = arith.subf %49, %17 : vector<16x16xf32>
    %51 = math.exp %50 : vector<16x16xf32>
    %52 = arith.addf %42, %51 : vector<16x16xf32>
    %c3_i32 = arith.constant 3 : i32
    %53 = vector.broadcast %c3_i32 : i32 to vector<16x16xi32>
    %54 = arith.cmpi eq, %6, %53 : vector<16x16xi32>
    %cst_37 = arith.constant 0.000000e+00 : f32
    %55 = vector.broadcast %cst_37 : f32 to vector<16x16xf32>
    %56 = arith.select %54, %49, %55 : vector<16x16xi1>, vector<16x16xf32>
    %57 = arith.addf %47, %56 : vector<16x16xf32>
    %c0_38 = arith.constant 0 : index
    %c0_39 = arith.constant 0 : index
    %58 = vector.load %arg7[%c0_38, %c0_39] : memref<16x16xf32, #tpu.memory_space<vmem>>, vector<16x16xf32>
    %59 = math.log %52 : vector<16x16xf32>
    %60 = arith.addf %17, %59 : vector<16x16xf32>
    %61 = arith.subf %60, %57 : vector<16x16xf32>
    %62 = arith.addf %58, %61 : vector<16x16xf32>
    %c0_40 = arith.constant 0 : index
    %c0_41 = arith.constant 0 : index
    %63 = vector.load %arg7[%c0_40, %c0_41] : memref<16x16xf32, #tpu.memory_space<vmem>>, vector<16x16xf32>
    tpu.vector_store %arg7[%c0_40, %c0_41], %62 {strides = array<i32>} : memref<16x16xf32, #tpu.memory_space<vmem>>, vector<16x16xf32>,
    %64 = tpu.reciprocal %52 {approx = true} : vector<16x16xf32> -> vector<16x16xf32>
    %c0_i32_42 = arith.constant 0 : i32
    %65 = vector.broadcast %c0_i32_42 : i32 to vector<16x16xi32>
    %66 = arith.cmpi eq, %6, %65 : vector<16x16xi32>
    %67 = arith.extui %66 : vector<16x16xi1> to vector<16x16xi32>
    %68 = arith.sitofp %67 : vector<16x16xi32> to vector<16x16xf32>
    %69 = arith.mulf %22, %64 : vector<16x16xf32>
    %c0_43 = arith.constant 0 : index
    %c0_44 = arith.constant 0 : index
    %c0_45 = arith.constant 0 : index
    %70 = vector.load %arg5[%c0_43, %c0_44, %c0_45] : memref<4x1x16xf32, #tpu.memory_space<vmem>>, vector<1x1x16xf32>
    %71 = vector.shape_cast %70 : vector<1x1x16xf32> to vector<1x16xf32>
    %72 = arith.mulf %69, %68 : vector<16x16xf32>
    %cst_46 = arith.constant dense<0.000000e+00> : vector<16xf32>
    %73 = vector.multi_reduction <add>, %72, %cst_46 [0] : vector<16x16xf32> to vector<16xf32>
    %74 = vector.shape_cast %73 : vector<16xf32> to vector<1x16xf32>
    %75 = arith.addf %71, %74 : vector<1x16xf32>
    %c0_47 = arith.constant 0 : index
    %c0_48 = arith.constant 0 : index
    %c0_49 = arith.constant 0 : index
    %76 = vector.load %arg5[%c0_47, %c0_48, %c0_49] : memref<4x1x16xf32, #tpu.memory_space<vmem>>, vector<1x1x16xf32>
    %77 = vector.shape_cast %76 : vector<1x1x16xf32> to vector<1x16xf32>
    %78 = vector.shape_cast %75 : vector<1x16xf32> to vector<1x1x16xf32>
    tpu.vector_store %arg5[%c0_47, %c0_48, %c0_49], %78 {strides = array<i32>} : memref<4x1x16xf32, #tpu.memory_space<vmem>>, vector<1x1x16xf32>,
    %c0_50 = arith.constant 0 : index
    %c0_51 = arith.constant 0 : index
    %c0_52 = arith.constant 0 : index
    %79 = vector.load %arg6[%c0_50, %c0_51, %c0_52] : memref<4x1x16xf32, #tpu.memory_space<vmem>>, vector<1x1x16xf32>
    %80 = vector.shape_cast %79 : vector<1x1x16xf32> to vector<1x16xf32>
    %81 = arith.addf %69, %68 : vector<16x16xf32>
    %cst_53 = arith.constant dense<0.000000e+00> : vector<16xf32>
    %82 = vector.multi_reduction <add>, %81, %cst_53 [0] : vector<16x16xf32> to vector<16xf32>
    %83 = vector.shape_cast %82 : vector<16xf32> to vector<1x16xf32>
    %84 = arith.addf %80, %83 : vector<1x16xf32>
    %c0_54 = arith.constant 0 : index
    %c0_55 = arith.constant 0 : index
    %c0_56 = arith.constant 0 : index
    %85 = vector.load %arg6[%c0_54, %c0_55, %c0_56] : memref<4x1x16xf32, #tpu.memory_space<vmem>>, vector<1x1x16xf32>
    %86 = vector.shape_cast %85 : vector<1x1x16xf32> to vector<1x16xf32>
    %87 = vector.shape_cast %84 : vector<1x16xf32> to vector<1x1x16xf32>
    tpu.vector_store %arg6[%c0_54, %c0_55, %c0_56], %87 {strides = array<i32>} : memref<4x1x16xf32, #tpu.memory_space<vmem>>, vector<1x1x16xf32>,
    %c1_i32_57 = arith.constant 1 : i32
    %88 = vector.broadcast %c1_i32_57 : i32 to vector<16x16xi32>
    %89 = arith.cmpi eq, %6, %88 : vector<16x16xi32>
    %90 = arith.extui %89 : vector<16x16xi1> to vector<16x16xi32>
    %91 = arith.sitofp %90 : vector<16x16xi32> to vector<16x16xf32>
    %92 = arith.mulf %31, %64 : vector<16x16xf32>
    %c1_58 = arith.constant 1 : index
    %c0_59 = arith.constant 0 : index
    %c0_60 = arith.constant 0 : index
    %93 = vector.load %arg5[%c1_58, %c0_59, %c0_60] : memref<4x1x16xf32, #tpu.memory_space<vmem>>, vector<1x1x16xf32>
    %94 = vector.shape_cast %93 : vector<1x1x16xf32> to vector<1x16xf32>
    %95 = arith.mulf %92, %91 : vector<16x16xf32>
    %cst_61 = arith.constant dense<0.000000e+00> : vector<16xf32>
    %96 = vector.multi_reduction <add>, %95, %cst_61 [0] : vector<16x16xf32> to vector<16xf32>
    %97 = vector.shape_cast %96 : vector<16xf32> to vector<1x16xf32>
    %98 = arith.addf %94, %97 : vector<1x16xf32>
    %c1_62 = arith.constant 1 : index
    %c0_63 = arith.constant 0 : index
    %c0_64 = arith.constant 0 : index
    %99 = vector.load %arg5[%c1_62, %c0_63, %c0_64] : memref<4x1x16xf32, #tpu.memory_space<vmem>>, vector<1x1x16xf32>
    %100 = vector.shape_cast %99 : vector<1x1x16xf32> to vector<1x16xf32>
    %101 = vector.shape_cast %98 : vector<1x16xf32> to vector<1x1x16xf32>
    tpu.vector_store %arg5[%c1_62, %c0_63, %c0_64], %101 {strides = array<i32>} : memref<4x1x16xf32, #tpu.memory_space<vmem>>, vector<1x1x16xf32>,
    %c1_65 = arith.constant 1 : index
    %c0_66 = arith.constant 0 : index
    %c0_67 = arith.constant 0 : index
    %102 = vector.load %arg6[%c1_65, %c0_66, %c0_67] : memref<4x1x16xf32, #tpu.memory_space<vmem>>, vector<1x1x16xf32>
    %103 = vector.shape_cast %102 : vector<1x1x16xf32> to vector<1x16xf32>
    %104 = arith.addf %92, %91 : vector<16x16xf32>
    %cst_68 = arith.constant dense<0.000000e+00> : vector<16xf32>
    %105 = vector.multi_reduction <add>, %104, %cst_68 [0] : vector<16x16xf32> to vector<16xf32>
    %106 = vector.shape_cast %105 : vector<16xf32> to vector<1x16xf32>
    %107 = arith.addf %103, %106 : vector<1x16xf32>
    %c1_69 = arith.constant 1 : index
    %c0_70 = arith.constant 0 : index
    %c0_71 = arith.constant 0 : index
    %108 = vector.load %arg6[%c1_69, %c0_70, %c0_71] : memref<4x1x16xf32, #tpu.memory_space<vmem>>, vector<1x1x16xf32>
    %109 = vector.shape_cast %108 : vector<1x1x16xf32> to vector<1x16xf32>
    %110 = vector.shape_cast %107 : vector<1x16xf32> to vector<1x1x16xf32>
    tpu.vector_store %arg6[%c1_69, %c0_70, %c0_71], %110 {strides = array<i32>} : memref<4x1x16xf32, #tpu.memory_space<vmem>>, vector<1x1x16xf32>,
    %c2_i32_72 = arith.constant 2 : i32
    %111 = vector.broadcast %c2_i32_72 : i32 to vector<16x16xi32>
    %112 = arith.cmpi eq, %6, %111 : vector<16x16xi32>
    %113 = arith.extui %112 : vector<16x16xi1> to vector<16x16xi32>
    %114 = arith.sitofp %113 : vector<16x16xi32> to vector<16x16xf32>
    %115 = arith.mulf %41, %64 : vector<16x16xf32>
    %c2_73 = arith.constant 2 : index
    %c0_74 = arith.constant 0 : index
    %c0_75 = arith.constant 0 : index
    %116 = vector.load %arg5[%c2_73, %c0_74, %c0_75] : memref<4x1x16xf32, #tpu.memory_space<vmem>>, vector<1x1x16xf32>
    %117 = vector.shape_cast %116 : vector<1x1x16xf32> to vector<1x16xf32>
    %118 = arith.mulf %115, %114 : vector<16x16xf32>
    %cst_76 = arith.constant dense<0.000000e+00> : vector<16xf32>
    %119 = vector.multi_reduction <add>, %118, %cst_76 [0] : vector<16x16xf32> to vector<16xf32>
    %120 = vector.shape_cast %119 : vector<16xf32> to vector<1x16xf32>
    %121 = arith.addf %117, %120 : vector<1x16xf32>
    %c2_77 = arith.constant 2 : index
    %c0_78 = arith.constant 0 : index
    %c0_79 = arith.constant 0 : index
    %122 = vector.load %arg5[%c2_77, %c0_78, %c0_79] : memref<4x1x16xf32, #tpu.memory_space<vmem>>, vector<1x1x16xf32>
    %123 = vector.shape_cast %122 : vector<1x1x16xf32> to vector<1x16xf32>
    %124 = vector.shape_cast %121 : vector<1x16xf32> to vector<1x1x16xf32>
    tpu.vector_store %arg5[%c2_77, %c0_78, %c0_79], %124 {strides = array<i32>} : memref<4x1x16xf32, #tpu.memory_space<vmem>>, vector<1x1x16xf32>,
    %c2_80 = arith.constant 2 : index
    %c0_81 = arith.constant 0 : index
    %c0_82 = arith.constant 0 : index
    %125 = vector.load %arg6[%c2_80, %c0_81, %c0_82] : memref<4x1x16xf32, #tpu.memory_space<vmem>>, vector<1x1x16xf32>
    %126 = vector.shape_cast %125 : vector<1x1x16xf32> to vector<1x16xf32>
    %127 = arith.addf %115, %114 : vector<16x16xf32>
    %cst_83 = arith.constant dense<0.000000e+00> : vector<16xf32>
    %128 = vector.multi_reduction <add>, %127, %cst_83 [0] : vector<16x16xf32> to vector<16xf32>
    %129 = vector.shape_cast %128 : vector<16xf32> to vector<1x16xf32>
    %130 = arith.addf %126, %129 : vector<1x16xf32>
    %c2_84 = arith.constant 2 : index
    %c0_85 = arith.constant 0 : index
    %c0_86 = arith.constant 0 : index
    %131 = vector.load %arg6[%c2_84, %c0_85, %c0_86] : memref<4x1x16xf32, #tpu.memory_space<vmem>>, vector<1x1x16xf32>
    %132 = vector.shape_cast %131 : vector<1x1x16xf32> to vector<1x16xf32>
    %133 = vector.shape_cast %130 : vector<1x16xf32> to vector<1x1x16xf32>
    tpu.vector_store %arg6[%c2_84, %c0_85, %c0_86], %133 {strides = array<i32>} : memref<4x1x16xf32, #tpu.memory_space<vmem>>, vector<1x1x16xf32>,
    %c3_i32_87 = arith.constant 3 : i32
    %134 = vector.broadcast %c3_i32_87 : i32 to vector<16x16xi32>
    %135 = arith.cmpi eq, %6, %134 : vector<16x16xi32>
    %136 = arith.extui %135 : vector<16x16xi1> to vector<16x16xi32>
    %137 = arith.sitofp %136 : vector<16x16xi32> to vector<16x16xf32>
    %138 = arith.mulf %51, %64 : vector<16x16xf32>
    %c3_88 = arith.constant 3 : index
    %c0_89 = arith.constant 0 : index
    %c0_90 = arith.constant 0 : index
    %139 = vector.load %arg5[%c3_88, %c0_89, %c0_90] : memref<4x1x16xf32, #tpu.memory_space<vmem>>, vector<1x1x16xf32>
    %140 = vector.shape_cast %139 : vector<1x1x16xf32> to vector<1x16xf32>
    %141 = arith.mulf %138, %137 : vector<16x16xf32>
    %cst_91 = arith.constant dense<0.000000e+00> : vector<16xf32>
    %142 = vector.multi_reduction <add>, %141, %cst_91 [0] : vector<16x16xf32> to vector<16xf32>
    %143 = vector.shape_cast %142 : vector<16xf32> to vector<1x16xf32>
    %144 = arith.addf %140, %143 : vector<1x16xf32>
    %c3_92 = arith.constant 3 : index
    %c0_93 = arith.constant 0 : index
    %c0_94 = arith.constant 0 : index
    %145 = vector.load %arg5[%c3_92, %c0_93, %c0_94] : memref<4x1x16xf32, #tpu.memory_space<vmem>>, vector<1x1x16xf32>
    %146 = vector.shape_cast %145 : vector<1x1x16xf32> to vector<1x16xf32>
    %147 = vector.shape_cast %144 : vector<1x16xf32> to vector<1x1x16xf32>
    tpu.vector_store %arg5[%c3_92, %c0_93, %c0_94], %147 {strides = array<i32>} : memref<4x1x16xf32, #tpu.memory_space<vmem>>, vector<1x1x16xf32>,
    %c3_95 = arith.constant 3 : index
    %c0_96 = arith.constant 0 : index
    %c0_97 = arith.constant 0 : index
    %148 = vector.load %arg6[%c3_95, %c0_96, %c0_97] : memref<4x1x16xf32, #tpu.memory_space<vmem>>, vector<1x1x16xf32>
    %149 = vector.shape_cast %148 : vector<1x1x16xf32> to vector<1x16xf32>
    %150 = arith.addf %138, %137 : vector<16x16xf32>
    %cst_98 = arith.constant dense<0.000000e+00> : vector<16xf32>
    %151 = vector.multi_reduction <add>, %150, %cst_98 [0] : vector<16x16xf32> to vector<16xf32>
    %152 = vector.shape_cast %151 : vector<16xf32> to vector<1x16xf32>
    %153 = arith.addf %149, %152 : vector<1x16xf32>
    %c3_99 = arith.constant 3 : index
    %c0_100 = arith.constant 0 : index
    %c0_101 = arith.constant 0 : index
    %154 = vector.load %arg6[%c3_99, %c0_100, %c0_101] : memref<4x1x16xf32, #tpu.memory_space<vmem>>, vector<1x1x16xf32>
    %155 = vector.shape_cast %154 : vector<1x1x16xf32> to vector<1x16xf32>
    %156 = vector.shape_cast %153 : vector<1x16xf32> to vector<1x1x16xf32>
    tpu.vector_store %arg6[%c3_99, %c0_100, %c0_101], %156 {strides = array<i32>} : memref<4x1x16xf32, #tpu.memory_space<vmem>>, vector<1x1x16xf32>,
    %c1_i32_102 = arith.constant 1 : i32
    %157 = arith.cmpi eq, %1, %c1_i32_102 : i32
    %158 = arith.extui %157 : i1 to i32
    %c0_i32_103 = arith.constant 0 : i32
    %159 = arith.cmpi ne, %158, %c0_i32_103 : i32
    scf.if %159 {
      %c0_104 = arith.constant 0 : index
      %c0_105 = arith.constant 0 : index
      %c0_106 = arith.constant 0 : index
      %160 = vector.load %arg5[%c0_104, %c0_105, %c0_106] : memref<4x1x16xf32, #tpu.memory_space<vmem>>, vector<4x1x16xf32>
      %cst_107 = arith.constant 2.000000e+00 : f32
      %161 = vector.broadcast %cst_107 : f32 to vector<4x1x16xf32>
      %162 = arith.mulf %161, %160 : vector<4x1x16xf32>
      %cst_108 = arith.constant 1.000000e+00 : f32
      %163 = vector.broadcast %cst_108 : f32 to vector<4x1x16xf32>
      %164 = arith.addf %162, %163 : vector<4x1x16xf32>
      %c0_109 = arith.constant 0 : index
      %c0_110 = arith.constant 0 : index
      %c0_111 = arith.constant 0 : index
      %165 = vector.load %arg6[%c0_109, %c0_110, %c0_111] : memref<4x1x16xf32, #tpu.memory_space<vmem>>, vector<4x1x16xf32>
      %cst_112 = arith.constant 1.000000e+00 : f32
      %166 = vector.broadcast %cst_112 : f32 to vector<4x1x16xf32>
      %167 = arith.addf %165, %166 : vector<4x1x16xf32>
      %168 = arith.divf %164, %167 : vector<4x1x16xf32>
      %cst_113 = arith.constant dense<0.000000e+00> : vector<1x16xf32>
      %169 = vector.multi_reduction <add>, %168, %cst_113 [0] : vector<4x1x16xf32> to vector<1x16xf32>
      %cst_114 = arith.constant dense<0.000000e+00> : vector<1xf32>
      %170 = vector.multi_reduction <add>, %169, %cst_114 [1] : vector<1x16xf32> to vector<1xf32>
      %171 = vector.shape_cast %170 : vector<1xf32> to vector<1x1xf32>
      %c0_115 = arith.constant 0 : index
      %c0_116 = arith.constant 0 : index
      %172 = vector.load %arg7[%c0_115, %c0_116] : memref<16x16xf32, #tpu.memory_space<vmem>>, vector<16x16xf32>
      %cst_117 = arith.constant dense<0.000000e+00> : vector<16xf32>
      %173 = vector.multi_reduction <add>, %172, %cst_117 [1] : vector<16x16xf32> to vector<16xf32>
      %174 = vector.shape_cast %173 : vector<16xf32> to vector<16x1xf32>
      %cst_118 = arith.constant dense<0.000000e+00> : vector<1xf32>
      %175 = vector.multi_reduction <add>, %174, %cst_118 [0] : vector<16x1xf32> to vector<1xf32>
      %176 = vector.shape_cast %175 : vector<1xf32> to vector<1x1xf32>
      %cst_119 = arith.constant 0.001953125 : f32
      %177 = vector.broadcast %cst_119 : f32 to vector<1x1xf32>
      %178 = arith.mulf %176, %177 : vector<1x1xf32>
      %cst_120 = arith.constant 1.562500e-02 : f32
      %179 = vector.broadcast %cst_120 : f32 to vector<1x1xf32>
      %180 = arith.mulf %171, %179 : vector<1x1xf32>
      %cst_121 = arith.constant 1.000000e+00 : f32
      %181 = vector.broadcast %cst_121 : f32 to vector<1x1xf32>
      %182 = arith.subf %181, %180 : vector<1x1xf32>
      %cst_122 = arith.constant 3.000000e-01 : f32
      %183 = vector.broadcast %cst_122 : f32 to vector<1x1xf32>
      %184 = arith.mulf %183, %178 : vector<1x1xf32>
      %cst_123 = arith.constant 0.699999988 : f32
      %185 = vector.broadcast %cst_123 : f32 to vector<1x1xf32>
      %186 = arith.mulf %185, %182 : vector<1x1xf32>
      %187 = arith.addf %184, %186 : vector<1x1xf32>
      %c0_124 = arith.constant 0 : index
      %c0_125 = arith.constant 0 : index
      %188 = vector.load %arg4[%c0_124, %c0_125] : memref<1x1xf32, #tpu.memory_space<vmem>>, vector<1x1xf32>
      tpu.vector_store %arg4[%c0_124, %c0_125], %187 {strides = array<i32>} : memref<1x1xf32, #tpu.memory_space<vmem>>, vector<1x1xf32>,
    } else {
    }
    return
  }
  func.func @transform_0(%arg0: i32, %arg1: i32) -> (i32, i32, i32, i32) {
    %c0_i32 = arith.constant 0 : i32
    %c0_i32_0 = arith.constant 0 : i32
    %c0_i32_1 = arith.constant 0 : i32
    return %arg0, %c0_i32, %arg1, %c0_i32_0 : i32, i32, i32, i32
  }
  func.func @transform_1(%arg0: i32, %arg1: i32) -> (i32, i32, i32) {
    %c0_i32 = arith.constant 0 : i32
    %c0_i32_0 = arith.constant 0 : i32
    return %arg0, %arg1, %c0_i32 : i32, i32, i32
  }
  func.func @transform_2(%arg0: i32, %arg1: i32) -> (i32, i32) {
    %c0_i32 = arith.constant 0 : i32
    %c0_i32_0 = arith.constant 0 : i32
    %c0_i32_1 = arith.constant 0 : i32
    return %c0_i32, %c0_i32_0 : i32, i32
  }
}

</mosaic_0001>

<bundles_post_ra>
// kernel: tpu_custom_call.1
= control target key start
LH: loop header
LB: loop body
LE: loop exit
PB: predicated region body
PF: predicated region fallthrough
CT: control target
= control target key end

     0   :  { %7 = vsyncpa [#allocation6], 0  ;;  %s1230_s0 = inlined_call_operand.hbm [shape: f32[2,4,16,16], index: 0, kind: input, shape index: {}]   ;;  %s1231_s1 = inlined_call_operand.hbm [shape: s32[2,16,16], index: 1, kind: input, shape index: {}]   ;;  %s1232_s2 = inlined_call_operand.hbm [shape: f32[1,1], index: 2, kind: output, shape index: {}]  }
   0x1   :  { %9 = vsyncpa [#allocation6 + $0x1], 0 }
   0x2   :  { %10 = vsyncpa [#allocation9], 0 }
   0x3   :  { %12 = vsyncpa [#allocation9 + $0x1], 0 }
   0x4   :  { %13 = vsyncpa [#allocation7], 0  ;;  %s927_s9 = smov 0   ;;  %s929_s10 = smov 0  }
   0x5   :  { %s931_s11 = smov 0   ;;  %s933_s12 = smov 0  }
   0x6   :  { %s935_s13 = smov 0   ;;  %s937_s14 = smov 0  }
   0x7 LB: > { %s622_s15 = sadd.s32 4294967295, %s903_s14   ;;  %s31_s16 = sadd.s32 1, %s899_s13  ;;  %s903_s14 = sphi %s937_s14, %s19_s14   ;;  %s899_s13 = sphi %s935_s13, %s1244_s13   ;;  %s895_s12 = sphi %s933_s12, %s1243_s12   ;;  %s891_s11 = sphi %s931_s11, %s1242_s11   ;;  %s887_s10 = sphi %s929_s10, %s1241_s10   ;;  %s883_s9 = sphi %s927_s9, %s1240_s9  }
   0x8   : > { %p33_p0 = scmp.ge.s32.totalorder %s31_s16, 2  ;;  %s40_s17 = sadd.s32 1, %s891_s11 }
   0x9   : > { %p47_p1 = scmp.ne.s32.totalorder %s891_s11, %s887_s10  ;;  %p48_p2 = scmp.eq.s32.totalorder %s903_s14, 0 }
   0xa   : > { %s1246_s16 = smov (%p33_p0, %s31_s16), 0  ;;  %p53_p4 = scmp.ne.s32.totalorder %s887_s10, %s883_s9 }
   0xb   : > { %p963_p3 = por %p48_p2, %p47_p1  ;;  %s35_s19 = ssub.s32 %s899_s13, %s1246_s16 }
   0xc   : > { %p54_p5 = scmp.eq.s32.totalorder %s622_s15, 0  ;;  %p38_p6 = scmp.eq.s32.totalorder %s35_s19, 0 }
   0xd   : > { %p671_p8 = scmp.lt.s32.totalorder %s903_s14, 2  ;;  %s981_s22 = sand.u32 1, %s891_s11  }
   0xe   : > { %p972_p7 = por %p54_p5, %p53_p4  ;;  %s654_s23 = sshll.u32 %s899_s13, 10 }
   0xf   : > { %s978_s21 = scalar_select %p38_p6, %s891_s11, %s40_s17  }
  0x10   : > { %s1235_s20 = scalar_select %p972_p7, 1, 0 }
  0x11   : > { %s625_s24 = sshll.u32 %s981_s22, 6  ;;  %s988_s27 = scalar_lea.hbm %s1230_s0, %s654_s23 }
  0x12   : > { %s130_s28 = scalar_lea.vmem [#allocation5], %s625_s24  ;;  %p992_p9 = pnand %p671_p8, %p963_p3 }
  0x13   : > { %s139_s29 = sshll.u32 %s130_s28, 4  ;;  %s127_s3 = scalar_lea.sflag [#allocation6], %s981_s22  ;;  %s996_s29 = int_to_ptr.vmem [resolvable:$true] %s139_s29 }
  0x14   : > { %s759_s4 = scalar_lea.hbm %s988_s27, 1024  ;;  %p761_p11 = pneg %p992_p9 }
  0x15   : > { %p760_p10 = scmp.ne.s32.totalorder %s988_s27, %s759_s4  ;;  %s764_s7 = scalar_lea.hbm %s1230_s0, 2048 }
  0x16   : > { %p765_p0 = scmp.lt.u32.totalorder %s988_s27, %s1230_s0  ;;  %p766_p1 = scmp.lt.u32.totalorder %s764_s7, %s759_s4 }
  0x17   : > { %p762_p12 = pnand %p761_p11, %p760_p10  ;;  %p768_p3 = scmp.lt.u32.totalorder %s759_s4, %s988_s27 }
  0x18   : > { %p767_p2 = por %p766_p1, %p765_p0 }
  0x19   : > { %p763_p13 = pneg %p762_p12 }
  0x1a   : > { %p769_p4 = por %p768_p3, %p767_p2 }
  0x1c   : > { %p770_p5 = pnand %p769_p4, %p763_p13 }
  0x1e   : > { %773 = shalt.err (!%p770_p5)
}
  0x1f   : > { %s774_s17 = scalar_lea.vmem %s996_s29, 1024  ;;  %s905_s18 = smov [#allocation5]  }
  0x20   : > { %p775_p6 = scmp.ne.s32.totalorder %s996_s29, %s774_s17  ;;  %s779_s19 = sshll.u32 %s905_s18, 4  ;;  %s780_s19 = int_to_ptr.vmem [resolvable:$false] %s779_s19 }
  0x21   : > { %s781_s23 = scalar_lea.vmem %s780_s19, 2048  ;;  %p782_p12 = scmp.lt.s32.totalorder %s996_s29, %s780_s19 }
  0x22   : > { %p777_p8 = pnand %p775_p6, %p761_p11  ;;  %p783_p0 = scmp.lt.s32.totalorder %s781_s23, %s774_s17 }
  0x24   : > { %p778_p10 = pneg %p777_p8  ;;  %p784_p1 = por %p783_p0, %p782_p12 }
  0x26   : > { %p785_p2 = pnand %p784_p1, %p778_p10 }
  0x28   : > { %788 = shalt.err (!%p785_p2)
}
  0x29   : > { %s906_s24 = smov 128   ;;  %s907_s25 = smov 8  }
  0x2a   : > { %667 = dma.hbm_to_vmem [thread:$0]  (!%p992_p9), %s988_s27, 1024, %s996_s29, %s127_s3, %s906_s24, %s906_s24, %s907_s25  }
  0x2b   : > { %p631_p13 = scmp.ge.s32.totalorder %s903_s14, 1  ;;  %p170_p3 = scmp.lt.s32.totalorder %s903_s14, 3 }
  0x2c   : > { %s628_s26 = sshll.u32 %s981_s22, 4  ;;  %s655_s4 = sshll.u32 %s899_s13, 8 }
  0x2d   : > { %p1032_p4 = pnand %p631_p13, %p170_p3  ;;  %s153_s5 = scalar_lea.vmem [#allocation8], %s628_s26 }
  0x2e   : > { %s162_s6 = sshll.u32 %s153_s5, 4  ;;  %s1040_s9 = scalar_lea.hbm %s1231_s1, %s655_s4  ;;  %s1042_s6 = int_to_ptr.vmem [resolvable:$true] %s162_s6 }
  0x2f   : > { %s150_s27 = scalar_lea.sflag [#allocation9], %s981_s22  ;;  %s789_s29 = scalar_lea.hbm %s1040_s9, 256 }
  0x30   : > { %p790_p5 = scmp.ne.s32.totalorder %s1040_s9, %s789_s29  ;;  %s794_s18 = scalar_lea.hbm %s1231_s1, 512 }
  0x31   : > { %p795_p10 = scmp.lt.u32.totalorder %s1040_s9, %s1231_s1  ;;  %p796_p12 = scmp.lt.u32.totalorder %s794_s18, %s789_s29 }
  0x32   : > { %p792_p6 = pnand %p790_p5, %p761_p11  ;;  %p798_p1 = scmp.lt.u32.totalorder %s789_s29, %s1040_s9 }
  0x33   : > { %p797_p0 = por %p796_p12, %p795_p10 }
  0x34   : > { %p793_p8 = pneg %p792_p6 }
  0x35   : > { %p799_p2 = por %p798_p1, %p797_p0 }
  0x37   : > { %p800_p13 = pnand %p799_p2, %p793_p8 }
  0x39   : > { %803 = shalt.err (!%p800_p13)
}
  0x3a   : > { %s804_s26 = scalar_lea.vmem %s1042_s6, 256  ;;  %s908_s4 = smov [#allocation8]  }
  0x3b   : > { %p805_p3 = scmp.ne.s32.totalorder %s1042_s6, %s804_s26  ;;  %s809_s5 = sshll.u32 %s908_s4, 4  ;;  %s810_s5 = int_to_ptr.vmem [resolvable:$false] %s809_s5 }
  0x3c   : > { %s811_s7 = scalar_lea.vmem %s810_s5, 512  ;;  %p812_p7 = scmp.lt.s32.totalorder %s1042_s6, %s810_s5 }
  0x3d   : > { %p807_p5 = pnand %p805_p3, %p761_p11  ;;  %p813_p10 = scmp.lt.s32.totalorder %s811_s7, %s804_s26 }
  0x3f   : > { %p808_p6 = pneg %p807_p5  ;;  %p814_p12 = por %p813_p10, %p812_p7 }
  0x41   : > { %p815_p0 = pnand %p814_p12, %p808_p6 }
  0x43   : > { %818 = shalt.err (!%p815_p0)
}
  0x44   : > { %670 = dma.hbm_to_vmem [thread:$0]  (!%p992_p9), %s1040_s9, 256, %s1042_s6, %s150_s27, %s906_s24, %s906_s24, %s907_s25  }
  0x45   : > { %174 = sbr.rel (%p1032_p4) target bundleno = 368 (0x170), region = 28  ;;  %s176_s8 = sand.u32 (!%p1032_p4), 1, %s887_s10  }
  0x46   : > { %s632_s29 = sshll.u32 (!%p1032_p4), %s176_s8, 6  ;;  %s177_s3 = scalar_lea.sflag (!%p1032_p4), [#allocation6], %s176_s8 }
  0x47   : > { %s1076_s17 = scalar_lea.vmem (!%p1032_p4), [#allocation5], %s632_s29  ;;  %p1238_p7 = scmp.ne.s32.totalorder (!%p1032_p4), %s1235_s20, 0 }
  0x4c   : > { %870 = dma.done.wait (%p1238_p7), %s177_s3, 1024  }
  0x4d   : > { %872 = vsyncadd (%p1238_p7), %s177_s3, 4294966272  ;;  %s633_s22 = sshll.u32 %s176_s8, 4  ;;  %s186_s30 = scalar_lea.sflag [#allocation9], %s176_s8 }
  0x4e   : > { %s1082_s18 = scalar_lea.vmem [#allocation8], %s633_s22 }
  0x4f   : > { %874 = dma.done.wait (%p1238_p7), %s186_s30, 256  }
  0x50   : > { %876 = vsyncadd (%p1238_p7), %s186_s30, 4294967040  ;;  %p634_p9 = scmp.ne.s32.totalorder %s895_s12, 0 }
  0x51   : > { %vm217_vm0 = vcmask (!%p634_p9), 122880   ;;  %vm226_vm1 = vcmask (!%p634_p9), 130048   ;;  %v909_v0 = vmov (!%p634_p9), 0.0  }
  0x52   : > { %216 = sbr.rel (%p634_p9) target bundleno = 89 (0x59), region = 40  ;;  %218 = vst.msk [vmem:[#allocation2] sm:$0x1] (!%p634_p9), %vm217_vm0, %v909_v0  ;;  %219 = vst.msk [vmem:[#allocation2 + $0x1] sm:$0x1] (!%p634_p9), %vm217_vm0, %v909_v0 }
  0x53   : > { %220 = vst.msk [vmem:[#allocation2 + $0x2] sm:$0x1] (!%p634_p9), %vm217_vm0, %v909_v0  ;;  %221 = vst.msk [vmem:[#allocation2 + $0x3] sm:$0x1] (!%p634_p9), %vm217_vm0, %v909_v0 }
  0x54   : > { %222 = vst.msk [vmem:[#allocation3] sm:$0x1] (!%p634_p9), %vm217_vm0, %v909_v0  ;;  %223 = vst.msk [vmem:[#allocation3 + $0x1] sm:$0x1] (!%p634_p9), %vm217_vm0, %v909_v0 }
  0x55   : > { %224 = vst.msk [vmem:[#allocation3 + $0x2] sm:$0x1] (!%p634_p9), %vm217_vm0, %v909_v0  ;;  %225 = vst.msk [vmem:[#allocation3 + $0x3] sm:$0x1] (!%p634_p9), %vm217_vm0, %v909_v0 }
  0x56   : > { %227 = vst.msk [vmem:[#allocation4] sm:$0xff] (!%p634_p9), %vm226_vm1, %v909_v0  ;;  %228 = vst.msk [vmem:[#allocation4 + $0x8] sm:$0xff] (!%p634_p9), %vm226_vm1, %v909_v0 }
  0x59 PF: > { %v231_v1 = vld [vmem:[%s1076_s17] sm:$0xff]  ;;  %v635_v2 = vld [vmem:[%s1076_s17 + $0x10] sm:$0xff]  ;;  %v232_v6 = vld [vmem:[%s1076_s17 + $0x8] sm:$0xff]  ;;  %vm314_vm10 = vcmask 130048   ;;  %v910_v60 = vmov 0.0   ;;  %vm338_vm11 = vcmask 122880  }
  0x5a   : > { %v236_v3 = vmax.f32 %v231_v1, %v635_v2  ;;  %v1092_v4 = vld [vmem:[%s1076_s17 + $0x20] sm:$0xff]  ;;  %v1095_v5 = vld [vmem:[%s1076_s17 + $0x30] sm:$0xff]  ;;  %v636_v8 = vld [vmem:[%s1076_s17 + $0x18] sm:$0xff]  ;;  %p649_p11 = scmp.ne.s32.totalorder %s895_s12, 1 }
  0x5b   : > { %v638_v9 = vld [vmem:[%s1076_s17 + $0x28] sm:$0xff]  ;;  %v237_v10 = vmax.f32 %v232_v6, %v636_v8  ;;  %v1105_v12 = vld [vmem:[%s1076_s17 + $0x38] sm:$0xff]  ;;  %v229_v36 = vld [vmem:[%s1082_s18] sm:$0xff]  ;;  %vm525_vm12 = vcmask (!%p649_p11), 0  }
  0x5c   : > { %v241_v7 = vmax.f32 %v236_v3, %v1092_v4  ;;  %v230_v39 = vld [vmem:[%s1082_s18 + $0x8] sm:$0xff]  ;;  %vm254_vm2 = vcmp.eq.s32.totalorder %v229_v36, 0  ;;  %vm268_vm3 = vcmp.eq.s32.totalorder %v229_v36, 1  ;;  %vm282_vm6 = vcmp.eq.s32.totalorder %v229_v36, 2 }
  0x5d   : > { %v242_v13 = vmax.f32 %v237_v10, %v638_v9  ;;  %v256_v45 = vsel %vm254_vm2, %v231_v1, 0.0  ;;  %v270_v46 = vsel %vm268_vm3, %v635_v2, 0.0  ;;  %vm255_vm4 = vcmp.eq.s32.totalorder %v230_v39, 0 }
  0x5e   : > { %v1102_v11 = vmax.f32 %v241_v7, %v1095_v5  ;;  %vm269_vm5 = vcmp.eq.s32.totalorder %v230_v39, 1  ;;  %v257_v47 = vsel %vm255_vm4, %v232_v6, 0.0  ;;  %v272_v51 = vadd.f32 %v270_v46, %v256_v45 }
  0x5f   : > { %v1114_v18 = vmax.f32 %v242_v13, %v1105_v12  ;;  %v271_v48 = vsel %vm269_vm5, %v636_v8, 0.0  ;;  %vm283_vm7 = vcmp.eq.s32.totalorder %v230_v39, 2  ;;  %v284_v53 = vsel %vm282_vm6, %v1092_v4, 0.0 }
  0x60   : > { %v248_v14 = vsub.f32 %v231_v1, %v1102_v11  ;;  %v260_v15 = vsub.f32 %v635_v2, %v1102_v11  ;;  %v274_v16 = vsub.f32 %v1092_v4, %v1102_v11  ;;  %v288_v17 = vsub.f32 %v1095_v5, %v1102_v11 }
  0x61   : > { %v249_v23 = vsub.f32 %v232_v6, %v1114_v18  ;;  %v261_v24 = vsub.f32 %v636_v8, %v1114_v18  ;;  %v275_v25 = vsub.f32 %v638_v9, %v1114_v18  ;;  %v289_v26 = vsub.f32 %v1105_v12, %v1114_v18 }
  0x62   : > { %v250_v19 = vmul.f32 1.442695, %v248_v14  ;;  %v262_v20 = vmul.f32 1.442695, %v260_v15  ;;  %v276_v21 = vmul.f32 1.442695, %v274_v16  ;;  %v273_v52 = vadd.f32 %v271_v48, %v257_v47 }
  0x63   : > { %v290_v22 = vmul.f32 1.442695, %v288_v17  ;;  %v252_v27 = vmul.f32 1.442695, %v249_v23  ;;  %v264_v28 = vmul.f32 1.442695, %v261_v24  ;;  %v286_v55 = vadd.f32 %v284_v53, %v272_v51 }
  0x64   : > { %727 = vpow2.f32 %v250_v19  ;;  %v278_v29 = vmul.f32 1.442695, %v275_v25  ;;  %v292_v30 = vmul.f32 1.442695, %v289_v26  ;;  %v285_v54 = vsel %vm283_vm7, %v638_v9, 0.0  ;;  %v302_v16 = vld [vmem:[#allocation4] sm:$0xff] }
  0x65   : > { %729 = vpow2.f32 %v262_v20  ;;  %vm296_vm8 = vcmp.eq.s32.totalorder %v229_v36, 3  ;;  %v287_v56 = vadd.f32 %v285_v54, %v273_v52  ;;  %vm297_vm9 = vcmp.eq.s32.totalorder %v230_v39, 3 }
  0x66   : > { %731 = vpow2.f32 %v276_v21  ;;  %v298_v57 = vsel %vm296_vm8, %v1095_v5, 0.0  ;;  %v299_v58 = vsel %vm297_vm9, %v1105_v12, 0.0  ;;  %v641_v61 = vsel %vm254_vm2, 1.0, %v910_v60 }
  0x67   : > { %733 = vpow2.f32 %v290_v22  ;;  %v643_v62 = vsel %vm268_vm3, 1.0, %v910_v60  ;;  %v645_v63 = vsel %vm282_vm6, 1.0, %v910_v60  ;;  %v647_v0 = vsel %vm296_vm8, 1.0, %v910_v60 }
  0x68   : > { %735 = vpow2.f32 %v252_v27  ;;  %v300_v2 = vadd.f32 %v298_v57, %v286_v55  ;;  %v301_v4 = vadd.f32 %v299_v58, %v287_v56  ;;  %v642_v6 = vsel %vm255_vm4, 1.0, %v910_v60 }
  0x69   : > { %737 = vpow2.f32 %v264_v28  ;;  %v644_v8 = vsel %vm269_vm5, 1.0, %v910_v60  ;;  %v646_v12 = vsel %vm283_vm7, 1.0, %v910_v60  ;;  %v648_v13 = vsel %vm297_vm9, 1.0, %v910_v60 }
  0x6a   : > { %739 = vpow2.f32 %v278_v29 }
  0x6b   : > { %741 = vpow2.f32 %v292_v30 }
  0x6e   : > { %v728_v31 = vpop.eup %727 }
  0x6f   : > { %v730_v32 = vpop.eup %729 }
  0x70   : > { %v732_v33 = vpop.eup %731  ;;  %v266_v34 = vadd.f32 %v730_v32, %v728_v31 }
  0x71   : > { %v734_v35 = vpop.eup %733 }
  0x72   : > { %v1122_v37 = vpop.eup %735  ;;  %v280_v38 = vadd.f32 %v732_v33, %v266_v34  ;;  %v303_v34 = vld [vmem:[#allocation4 + $0x8] sm:$0xff] }
  0x73   : > { %v1125_v40 = vpop.eup %737 }
  0x74   : > { %v740_v41 = vpop.eup %739  ;;  %v294_v42 = vadd.f32 %v734_v35, %v280_v38  ;;  %v267_v43 = vadd.f32 %v1125_v40, %v1122_v37 }
  0x75   : > { %v742_v44 = vpop.eup %741 }
  0x76   : > { %743 = vlog2.f32 %v294_v42  ;;  %v281_v49 = vadd.f32 %v740_v41, %v267_v43 }
  0x77   : > { %745 = vrcp.f32 %v294_v42 }
  0x78   : > { %v295_v50 = vadd.f32 %v742_v44, %v281_v49 }
  0x7a   : > { %747 = vlog2.f32 %v295_v50 }
  0x7b   : > { %749 = vrcp.f32 %v295_v50 }
  0x80   : > { %v744_v59 = vpop.eup %743 }
  0x81   : > { %v746_v1 = vpop.eup %745  ;;  %v305_v3 = vmul.f32 0.6931472, %v744_v59 }
  0x82   : > { %v394_v5 = vmul.f32 %v746_v1, %v732_v33  ;;  %v430_v7 = vmul.f32 %v746_v1, %v734_v35  ;;  %v323_v9 = vmul.f32 %v746_v1, %v728_v31  ;;  %v358_v14 = vmul.f32 %v746_v1, %v730_v32 }
  0x83   : > { %v308_v10 = vadd.f32 %v305_v3, %v1102_v11 }
  0x84   : > { %v748_v15 = vpop.eup %747  ;;  %v398_v17 = vmul.f32 %v645_v63, %v394_v5  ;;  %v413_v19 = vadd.f32 %v645_v63, %v394_v5  ;;  %v434_v20 = vmul.f32 %v647_v0, %v430_v7  ;;  %v449_v21 = vadd.f32 %v647_v0, %v430_v7 }
  0x85   : > { %v750_v22 = vpop.eup %749  ;;  %v310_v23 = vsub.f32 %v308_v10, %v300_v2  ;;  %v307_v24 = vmul.f32 0.6931472, %v748_v15  ;;  %v326_v25 = vmul.f32 %v641_v61, %v323_v9  ;;  %v341_v26 = vadd.f32 %v641_v61, %v323_v9 }
  0x86   : > { %v395_v27 = vmul.f32 %v750_v22, %v740_v41  ;;  %v431_v28 = vmul.f32 %v750_v22, %v742_v44  ;;  %v324_v11 = vmul.f32 %v750_v22, %v1122_v37  ;;  %v359_v29 = vmul.f32 %v750_v22, %v1125_v40 }
  0x87   : > { %v312_v30 = vadd.f32 %v310_v23, %v302_v16  ;;  %v309_v31 = vadd.f32 %v307_v24, %v1114_v18  ;;  %v328_v32 = vsel %vm314_vm10, %v326_v25, 0.0  ;;  %v343_v33 = vsel %vm314_vm10, %v341_v26, 0.0 }
  0x88   : > { %v399_v35 = vmul.f32 %v646_v12, %v395_v27  ;;  %v414_v36 = vadd.f32 %v646_v12, %v395_v27  ;;  %v435_v38 = vmul.f32 %v648_v13, %v431_v28  ;;  %v450_v39 = vadd.f32 %v648_v13, %v431_v28 }
  0x89   : > { %315 = vst.msk [vmem:[#allocation4] sm:$0xff] %vm314_vm10, %v312_v30  ;;  %v311_v41 = vsub.f32 %v309_v31, %v301_v4  ;;  %v327_v42 = vmul.f32 %v642_v6, %v324_v11  ;;  %v342_v43 = vadd.f32 %v642_v6, %v324_v11  ;;  %v362_v37 = vmul.f32 %v643_v62, %v358_v14  ;;  %v325_v11 = vld [vmem:[#allocation2] sm:$0x1] }
  0x8a   : > { %v363_v44 = vmul.f32 %v644_v8, %v359_v29  ;;  %v377_v40 = vadd.f32 %v643_v62, %v358_v14  ;;  %v378_v45 = vadd.f32 %v644_v8, %v359_v29  ;;  %v400_v18 = vsel %vm314_vm10, %v398_v17, 0.0 }
  0x8b   : > { %v313_v46 = vadd.f32 %v311_v41, %v303_v34  ;;  %v329_v47 = vsel %vm314_vm10, %v327_v42, 0.0  ;;  %v344_v48 = vsel %vm314_vm10, %v342_v43, 0.0  ;;  %v364_v49 = vsel %vm314_vm10, %v362_v37, 0.0  ;;  %v361_v41 = vld [vmem:[#allocation2 + $0x1] sm:$0x1] }
  0x8c   : > { %v330_v50 = vadd.f32 %v329_v47, %v328_v32  ;;  %v345_v51 = vadd.f32 %v344_v48, %v343_v33  ;;  %v365_v52 = vsel %vm314_vm10, %v363_v44, 0.0  ;;  %v379_v53 = vsel %vm314_vm10, %v377_v40, 0.0  ;;  %v340_v32 = vld [vmem:[#allocation3] sm:$0x1]  ;;  %v376_v44 = vld [vmem:[#allocation3 + $0x1] sm:$0x1] }
  0x8d   : > { %316 = vst.msk [vmem:[#allocation4 + $0x8] sm:$0xff] %vm314_vm10, %v313_v46  ;;  %v366_v54 = vadd.f32 %v365_v52, %v364_v49  ;;  %v380_v55 = vsel %vm314_vm10, %v378_v45, 0.0  ;;  %v401_v56 = vsel %vm314_vm10, %v399_v35, 0.0  ;;  %v415_v57 = vsel %vm314_vm10, %v413_v19, 0.0  ;;  %v397_v40 = vld [vmem:[#allocation2 + $0x2] sm:$0x1] }
  0x8e   : > { %v331_v58 = vrot.slane %v330_v50, 4  ;;  %v346_v59 = vrot.slane %v345_v51, 4  ;;  %v381_v60 = vadd.f32 %v380_v55, %v379_v53  ;;  %v402_v61 = vadd.f32 %v401_v56, %v400_v18 }
  0x8f   : > { %v367_v62 = vrot.slane %v366_v54, 4  ;;  %v416_v63 = vsel %vm314_vm10, %v414_v36, 0.0  ;;  %v436_v0 = vsel %vm314_vm10, %v434_v20, 0.0  ;;  %v437_v1 = vsel %vm314_vm10, %v435_v38, 0.0 }
  0x90   : > { %v332_v2 = vadd.f32 %v331_v58, %v330_v50  ;;  %v347_v3 = vadd.f32 %v346_v59, %v345_v51  ;;  %v382_v4 = vrot.slane %v381_v60, 4  ;;  %v403_v6 = vrot.slane %v402_v61, 4  ;;  %v433_v58 = vld [vmem:[#allocation2 + $0x3] sm:$0x1] }
  0x91   : > { %v368_v5 = vadd.f32 %v367_v62, %v366_v54  ;;  %v417_v7 = vadd.f32 %v416_v63, %v415_v57  ;;  %v438_v8 = vadd.f32 %v437_v1, %v436_v0  ;;  %v451_v9 = vsel %vm314_vm10, %v449_v21, 0.0  ;;  %v412_v57 = vld [vmem:[#allocation3 + $0x2] sm:$0x1]  ;;  %v448_v1 = vld [vmem:[#allocation3 + $0x3] sm:$0x1] }
  0x92   : > { %v333_v10 = vrot.slane %v332_v2, 2  ;;  %v348_v12 = vrot.slane %v347_v3, 2  ;;  %v383_v13 = vadd.f32 %v382_v4, %v381_v60  ;;  %v404_v14 = vadd.f32 %v403_v6, %v402_v61  ;;  %v504_v4 = vld [vmem:[#allocation4] sm:$0xff] (!%p649_p11) }
  0x93   : > { %v369_v15 = vrot.slane %v368_v5, 2  ;;  %v418_v16 = vrot.slane %v417_v7, 4  ;;  %v439_v17 = vrot.slane %v438_v8, 4  ;;  %v452_v19 = vsel %vm314_vm10, %v450_v39, 0.0 }
  0x94   : > { %v334_v20 = vadd.f32 %v333_v10, %v332_v2  ;;  %v349_v22 = vadd.f32 %v348_v12, %v347_v3  ;;  %v384_v23 = vrot.slane %v383_v13, 2  ;;  %v405_v24 = vrot.slane %v404_v14, 2  ;;  %v505_v6 = vld [vmem:[#allocation4 + $0x8] sm:$0xff] (!%p649_p11) }
  0x95   : > { %v370_v25 = vadd.f32 %v369_v15, %v368_v5  ;;  %v419_v26 = vadd.f32 %v418_v16, %v417_v7  ;;  %v440_v27 = vadd.f32 %v439_v17, %v438_v8  ;;  %v453_v28 = vadd.f32 %v452_v19, %v451_v9 }
  0x96   : > { %v335_v29 = vrot.slane %v334_v20, 1  ;;  %v350_v21 = vrot.slane %v349_v22, 1  ;;  %v385_v30 = vadd.f32 %v384_v23, %v383_v13  ;;  %v406_v31 = vadd.f32 %v405_v24, %v404_v14 }
  0x97   : > { %v371_v33 = vrot.slane %v370_v25, 1  ;;  %v420_v34 = vrot.slane %v419_v26, 2  ;;  %v441_v35 = vrot.slane %v440_v27, 2  ;;  %v454_v36 = vrot.slane %v453_v28, 4 }
  0x98   : > { %v336_v38 = vadd.f32 %v335_v29, %v334_v20  ;;  %v351_v39 = vadd.f32 %v350_v21, %v349_v22  ;;  %v386_v42 = vrot.slane %v385_v30, 1  ;;  %v407_v43 = vrot.slane %v406_v31, 1 }
  0x99   : > { %v372_v37 = vadd.f32 %v371_v33, %v370_v25  ;;  %v421_v45 = vadd.f32 %v420_v34, %v419_v26  ;;  %v442_v18 = vadd.f32 %v441_v35, %v440_v27  ;;  %v455_v46 = vadd.f32 %v454_v36, %v453_v28 }
  0x9a   : > { %v337_v47 = vadd.f32 %v336_v38, %v325_v11  ;;  %v352_v48 = vadd.f32 %v351_v39, %v340_v32  ;;  %v387_v49 = vadd.f32 %v386_v42, %v385_v30  ;;  %v408_v50 = vadd.f32 %v407_v43, %v406_v31 }
  0x9b   : > { %v373_v51 = vadd.f32 %v372_v37, %v361_v41  ;;  %v422_v52 = vrot.slane %v421_v45, 1  ;;  %v443_v53 = vrot.slane %v442_v18, 1  ;;  %v456_v54 = vrot.slane %v455_v46, 2 }
  0x9c   : > { %339 = vst.msk [vmem:[#allocation2] sm:$0x1] %vm338_vm11, %v337_v47  ;;  %353 = vst.msk [vmem:[#allocation3] sm:$0x1] %vm338_vm11, %v352_v48  ;;  %v388_v55 = vadd.f32 %v387_v49, %v376_v44  ;;  %v409_v56 = vadd.f32 %v408_v50, %v397_v40  ;;  %v506_v5 = vsel (!%p649_p11), %vm314_vm10, %v504_v4, 0.0  ;;  %v509_v7 = vsel (!%p649_p11), %vm314_vm10, %v505_v6, 0.0 }
  0x9d   : > { %374 = vst.msk [vmem:[#allocation2 + $0x1] sm:$0x1] %vm338_vm11, %v373_v51  ;;  %v423_v59 = vadd.f32 %v422_v52, %v421_v45  ;;  %v444_v60 = vadd.f32 %v443_v53, %v442_v18  ;;  %v457_v61 = vadd.f32 %v456_v54, %v455_v46  ;;  %507 = vadd.xlane.f32.xlu0 (!%p649_p11), %v506_v5 }
  0x9e   : > { %389 = vst.msk [vmem:[#allocation3 + $0x1] sm:$0x1] %vm338_vm11, %v388_v55  ;;  %410 = vst.msk [vmem:[#allocation2 + $0x2] sm:$0x1] %vm338_vm11, %v409_v56 }
  0x9f   : > { %v424_v62 = vadd.f32 %v423_v59, %v412_v57  ;;  %v445_v63 = vadd.f32 %v444_v60, %v433_v58  ;;  %v458_v0 = vrot.slane %v457_v61, 1  ;;  %465 = sbr.rel (%p649_p11) target bundleno = 343 (0x157), region = 44 }
  0xa1   : > { %425 = vst.msk [vmem:[#allocation3 + $0x2] sm:$0x1] %vm338_vm11, %v424_v62  ;;  %446 = vst.msk [vmem:[#allocation2 + $0x3] sm:$0x1] %vm338_vm11, %v445_v63  ;;  %v459_v2 = vadd.f32 %v458_v0, %v457_v61  ;;  %510 = vadd.xlane.f32.xlu0 (!%p649_p11), %v509_v7 }
  0xa3   : > { %v460_v3 = vadd.f32 %v459_v2, %v448_v1  ;;  %v478_v8 = vld [vmem:[#allocation3] sm:$0x1] (!%p649_p11)  ;;  %v466_v16 = vld [vmem:[#allocation2] sm:$0x1] (!%p649_p11) }
  0xa4   : > { %v482_v12 = vadd.f32 (!%p649_p11), 1.0, %v478_v8  ;;  %v467_v19 = vld [vmem:[#allocation2 + $0x1] sm:$0x1] (!%p649_p11)  ;;  %v470_v23 = vmul.f32 (!%p649_p11), 2.0, %v466_v16 }
  0xa5   : > { %461 = vst.msk [vmem:[#allocation3 + $0x3] sm:$0x1] %vm338_vm11, %v460_v3  ;;  %v479_v9 = vld [vmem:[#allocation3 + $0x1] sm:$0x1] (!%p649_p11)  ;;  %v468_v20 = vld [vmem:[#allocation2 + $0x2] sm:$0x1] (!%p649_p11) }
  0xa6   : > { %v483_v14 = vadd.f32 1.0, %v479_v9  ;;  %751 = vrcp.f32 %v482_v12  ;;  %v471_v24 = vmul.f32 2.0, %v467_v19  ;;  %v472_v25 = vmul.f32 2.0, %v468_v20 }
  0xa7   : > { %v474_v27 = vadd.f32 1.0, %v470_v23 }
  0xa8   : > { %v480_v10 = vld [vmem:[#allocation3 + $0x2] sm:$0x1]  ;;  %753 = vrcp.f32 %v483_v14  ;;  %v469_v22 = vld [vmem:[#allocation2 + $0x3] sm:$0x1]  ;;  %v475_v28 = vadd.f32 1.0, %v471_v24  ;;  %v476_v11 = vadd.f32 1.0, %v472_v25 }
  0xa9   : > { %v484_v15 = vadd.f32 1.0, %v480_v10  ;;  %v473_v26 = vmul.f32 2.0, %v469_v22 }
  0xab   : > { %755 = vrcp.f32 %v484_v15  ;;  %v477_v21 = vadd.f32 1.0, %v473_v26 }
  0xac   : > { %v481_v13 = vld [vmem:[#allocation3 + $0x3] sm:$0x1] }
  0xad   : > { %v485_v17 = vadd.f32 1.0, %v481_v13 }
  0xaf   : > { %757 = vrcp.f32 %v485_v17 }
  0xb0   : > { %v752_v29 = vpop.eup %751 }
  0xb1   : > { %v487_v31 = vmul.f32 %v752_v29, %v474_v27 }
  0xb2   : > { %v754_v30 = vpop.eup %753 }
  0xb3   : > { %v489_v33 = vmul.f32 %v754_v30, %v475_v28  ;;  %v494_v36 = vsel %vm338_vm11, %v487_v31, 0.0 }
  0xb5   : > { %v756_v32 = vpop.eup %755  ;;  %v495_v39 = vsel %vm338_vm11, %v489_v33, 0.0 }
  0xb6   : > { %v491_v35 = vmul.f32 %v756_v32, %v476_v11  ;;  %v496_v41 = vadd.f32 %v495_v39, %v494_v36 }
  0xb8   : > { %v497_v42 = vsel %vm338_vm11, %v491_v35, 0.0 }
  0xb9   : > { %v758_v34 = vpop.eup %757  ;;  %v498_v37 = vadd.f32 %v497_v42, %v496_v41 }
  0xba   : > { %v493_v38 = vmul.f32 %v758_v34, %v477_v21 }
  0xbc   : > { %v499_v43 = vsel %vm338_vm11, %v493_v38, 0.0 }
  0xbd   : > { %v500_v44 = vadd.f32 %v499_v43, %v498_v37 }
  0xbf   : > { %v501_v40 = vsel %vm338_vm11, %v500_v44, 0.0 }
  0xc0   : > { %502 = vadd.xlane.f32.xlu1 %v501_v40 }
 0x12a   : > { %v508_v45 = vpop.xlane.xlu0 %507 }
 0x12e   : > { %v511_v18 = vpop.xlane.xlu0 %510 }
 0x12f   : > { %v512_v46 = vadd.f32 %v511_v18, %v508_v45 }
 0x131   : > { %v513_v47 = vrot.slane %v512_v46, 4 }
 0x133   : > { %v514_v48 = vadd.f32 %v513_v47, %v512_v46 }
 0x135   : > { %v515_v49 = vrot.slane %v514_v48, 2 }
 0x137   : > { %v516_v50 = vadd.f32 %v515_v49, %v514_v48 }
 0x139   : > { %v517_v51 = vrot.slane %v516_v50, 1 }
 0x13b   : > { %v518_v52 = vadd.f32 %v517_v51, %v516_v50 }
 0x13d   : > { %v519_v54 = vmul.f32 0.001953125, %v518_v52 }
 0x13f   : > { %v522_v57 = vmul.f32 0.3, %v519_v54 }
 0x14d   : > { %v503_v53 = vpop.xlane.xlu1 %502 }
 0x14e   : > { %v520_v55 = vmul.f32 0.015625, %v503_v53 }
 0x150   : > { %v521_v56 = vsub.f32 1.0, %v520_v55 }
 0x152   : > { %v523_v58 = vmul.f32 0.7, %v521_v56 }
 0x154   : > { %v524_v59 = vadd.f32 %v523_v58, %v522_v57 }
 0x156   : > { %526 = vst.msk [vmem:[#allocation10] sm:$0x1] %vm525_vm12, %v524_v59 }
 0x157 PF: > { %p1186_p4 = scmp.eq.s32.totalorder %s622_s15, 1  ;;  %s911_s20 = smov [#allocation10]  }
 0x158   : > { %s534_s24 = sshll.u32 %s911_s20, 4  ;;  %s535_s24 = int_to_ptr.vmem [resolvable:$true] %s534_s24 }
 0x159   : > { %s819_s25 = scalar_lea.vmem %s535_s24, 16  ;;  %s825_s28 = scalar_lea.vmem %s535_s24, 32 }
 0x15a   : > { %p820_p8 = scmp.ne.s32.totalorder %s535_s24, %s819_s25  ;;  %p826_p13 = scmp.lt.s32.totalorder %s535_s24, %s535_s24 }
 0x15b   : > { %p827_p3 = scmp.lt.s32.totalorder %s825_s28, %s819_s25 }
 0x15c   : > { %p821_p1 = pnand %p820_p8, %p1186_p4 }
 0x15d   : > { %p828_p5 = por %p827_p3, %p826_p13 }
 0x15e   : > { %p822_p2 = pneg %p821_p1 }
 0x160   : > { %p829_p6 = pnand %p828_p5, %p822_p2 }
 0x162   : > { %832 = shalt.err (!%p829_p6)
}
 0x163   : > { %s833_s9 = scalar_lea.hbm %s1232_s2, 16 }
 0x164   : > { %p834_p10 = scmp.ne.s32.totalorder %s1232_s2, %s833_s9  ;;  %p839_p7 = scmp.lt.u32.totalorder %s833_s9, %s1232_s2 }
 0x166   : > { %p835_p12 = pnand %p834_p10, %p1186_p4 }
 0x168   : > { %p836_p0 = pneg %p835_p12 }
 0x16a   : > { %p841_p9 = pnand %p839_p7, %p836_p0 }
 0x16c   : > { %844 = shalt.err (!%p841_p9)
}
 0x16d   : > { %661 = dma.vmem_to_hbm [thread:$0]  (%p1186_p4), %s535_s24, 16, %s1232_s2, [#allocation7]  }
 0x16e   : > { %878 = dma.done.wait (%p1186_p4), [#allocation7], 16  }
 0x16f   : > { %880 = vsyncadd (%p1186_p4), [#allocation7], 4294967280 }
 0x170 PF: > { %s19_s14 = sadd.s32 1, %s903_s14   ;;  %s1240_s9 = smov %s887_s10 }
 0x171   : > { %p16_p11 = scmp.ge.s32.totalorder %s19_s14, 4   ;;  %s1241_s10 = smov %s891_s11 }
 0x172   : > { %s1242_s11 = smov %s978_s21  ;;  %s1243_s12 = smov %s899_s13 }
 0x173   : > { %s1244_s13 = smov %s1246_s16  ;;  %18 = sbr.rel (!%p16_p11) target bundleno = 7 (0x7), region = 95 }
 0x17a   :  { %547 = vsyncpa [#allocation6], 1 }
 0x17b   :  { %549 = vsyncpa [#allocation6 + $0x1], 1 }
 0x17c   :  { %550 = vsyncpa [#allocation9], 1 }
 0x17d   :  { %552 = vsyncpa [#allocation9 + $0x1], 1 }
 0x17e   :  { %553 = vsyncpa [#allocation7], 1 }
 0x17f   :  { %555 = vsyncpa [#allocation7 + $0x1], 1 }

</bundles_post_ra>
